<compile_context>
chip_gen: v7x
topology: tpu7x:2x2x1
jax: 0.10.0
libtpu: 0.0.40
codegen_flags: <defaults>
</compile_context>

<pallas_src>
import jax
import jax.numpy as jnp
from jax.experimental import pallas as pl
from jax.experimental.pallas import tpu as pltpu

_EPS = 1e-6
_LANES = 128
_MAX_BLOCK_ROWS = 4096  # 2 MiB f32 per input buffer -> 8 MiB double-buffered
_MIN_BLOCK_ROWS = 512   # don't shrink below 256 KiB/buffer just to add steps


def _round_up(x, m):
    return ((x + m - 1) // m) * m


def _make_gdl_kernel(block_rows, valid_rows_last, need_mask):
    """Per-block kernel: writes a (3, 128) lane-wise partial-sum block:
       row 0 = sum(label), row 1 = sum(pred*label), row 2 = sum(pred)."""

    def _store_sums(l, p, out_ref):
        # Row (sublane) reductions only; cross-lane reduce deferred to wrapper.
        out_ref[0:1, :] = jnp.sum(l, axis=0, keepdims=True)
        out_ref[1:2, :] = jnp.sum(p * l, axis=0, keepdims=True)
        out_ref[2:3, :] = jnp.sum(p, axis=0, keepdims=True)

    def kernel(label_ref, pred_ref, out_ref):
        if not need_mask:
            _store_sums(label_ref[...].astype(jnp.float32),
                        pred_ref[...].astype(jnp.float32), out_ref)
        else:
            is_last = pl.program_id(0) == pl.num_programs(0) - 1

            @pl.when(jnp.logical_not(is_last))
            def _():
                _store_sums(label_ref[...].astype(jnp.float32),
                            pred_ref[...].astype(jnp.float32), out_ref)

            @pl.when(is_last)
            def _():
                # Pallas does not zero-fill the out-of-range rows of a partial
                # edge block; jnp.where is safe even against NaN garbage.
                row = jax.lax.broadcasted_iota(
                    jnp.int32, (block_rows, _LANES), 0)
                valid = row < valid_rows_last
                l = jnp.where(valid, label_ref[...].astype(jnp.float32), 0.0)
                p = jnp.where(valid, pred_ref[...].astype(jnp.float32), 0.0)
                _store_sums(l, p, out_ref)

    return kernel


def _partial_sums_pallas(l2d, p2d):
    rows = l2d.shape[0]

    # Balanced grid: avoid a nearly-empty last block; keep >= ~4 steps when the
    # input is large enough so the parallel axis shards across v7x megacore.
    num_blocks = max(pl.cdiv(rows, _MAX_BLOCK_ROWS),
                     min(4, pl.cdiv(rows, _MIN_BLOCK_ROWS)))
    if num_blocks <= 1:
        num_blocks = 1
        block_rows = rows               # full-extent block: always legal
    else:
        block_rows = _round_up(pl.cdiv(rows, num_blocks), 8)
        num_blocks = pl.cdiv(rows, block_rows)

    valid_rows_last = rows - (num_blocks - 1) * block_rows
    need_mask = (rows % block_rows) != 0

    kernel = _make_gdl_kernel(block_rows, valid_rows_last, need_mask)

    itemsize = jnp.dtype(l2d.dtype).itemsize
    cost = pl.CostEstimate(
        flops=4 * rows * _LANES,
        transcendentals=0,
        bytes_accessed=2 * rows * _LANES * itemsize
        + 3 * num_blocks * _LANES * 4,
    )

    in_spec = pl.BlockSpec((block_rows, _LANES), lambda i: (i, 0))
    out_spec = pl.BlockSpec((3, _LANES), lambda i: (0, i))

    return pl.pallas_call(
        kernel,
        out_shape=jax.ShapeDtypeStruct((3, num_blocks * _LANES), jnp.float32),
        grid_spec=pltpu.PrefetchScalarGridSpec(
            num_scalar_prefetch=0,
            grid=(num_blocks,),
            in_specs=[in_spec, in_spec],
            out_specs=out_spec,
        ),
        compiler_params=pltpu.CompilerParams(
            dimension_semantics=("parallel",),
            vmem_limit_bytes=32 * 1024 * 1024,
        ),
        cost_estimate=cost,
    )(l2d, p2d)


@jax.jit
def gdl_loss(label, prediction):
    assert label.shape == prediction.shape, (
        "'prediction' and 'target' must have the same shape")

    # Flatten (free bitcast); keep native dtype — kernel upcasts to f32 in VMEM.
    l_flat = jnp.ravel(label)
    p_flat = jnp.ravel(prediction)
    n = l_flat.shape[0]

    rows = n // _LANES
    n_main = rows * _LANES

    s_l = jnp.float32(0.0)
    s_pl = jnp.float32(0.0)
    s_p = jnp.float32(0.0)

    if rows > 0:
        if n_main == n:
            l2d = l_flat.reshape(rows, _LANES)      # free bitcast, no copy
            p2d = p_flat.reshape(rows, _LANES)
        else:
            # Ragged size: stream only the lane-aligned prefix (no jnp.pad
            # read+write of a full padded copy of both inputs).
            l2d = jax.lax.slice(l_flat, (0,), (n_main,)).reshape(rows, _LANES)
            p2d = jax.lax.slice(p_flat, (0,), (n_main,)).reshape(rows, _LANES)

        parts = _partial_sums_pallas(l2d, p2d)
        s_l = jnp.sum(parts[0])
        s_pl = jnp.sum(parts[1])
        s_p = jnp.sum(parts[2])

    if n_main != n:
        # < 128-element tail: trivial plain-jnp reduce in the wrapper.
        l_tail = jax.lax.slice(l_flat, (n_main,), (n,)).astype(jnp.float32)
        p_tail = jax.lax.slice(p_flat, (n_main,), (n,)).astype(jnp.float32)
        s_l = s_l + jnp.sum(l_tail)
        s_pl = s_pl + jnp.sum(p_tail * l_tail)
        s_p = s_p + jnp.sum(p_tail)

    # Tiny finalize (matches the PyTorch clamp ordering exactly).
    w_l = 1.0 / jnp.maximum(s_l * s_l, _EPS)
    intersect = s_pl * w_l
    denominator = jnp.maximum((s_p + s_l) * w_l, _EPS)
    return 1.0 - 2.0 * (intersect / denominator)


def _gdl_reference(label, prediction):
    l = jnp.ravel(label).astype(jnp.float32)
    p = jnp.ravel(prediction).astype(jnp.float32)
    w_l = 1.0 / jnp.maximum(jnp.sum(l) ** 2, _EPS)
    intersect = jnp.sum(p * l) * w_l
    denominator = jnp.maximum(jnp.sum(p + l) * w_l, _EPS)
    return 1.0 - 2.0 * (intersect / denominator)


if __name__ == "__main__":
    key = jax.random.PRNGKey(0)
    k1, k2 = jax.random.split(key)
    # Small NCHW-shaped inputs, matching the PyTorch module's typical usage.
    label = (jax.random.uniform(k1, (2, 4, 16, 16)) > 0.5).astype(jnp.float32)
    prediction = jax.random.uniform(k2, (2, 4, 16, 16), dtype=jnp.float32)

    loss = gdl_loss(label, prediction)
    jax.block_until_ready(loss)

    ref = _gdl_reference(label, prediction)
    assert jnp.allclose(loss, ref, atol=1e-5, rtol=1e-5), (loss, ref)

    print("KERNEL_OK")
</pallas_src>

<mosaic_0001>
module attributes {stable_mosaic.version = 11 : i64} {
  func.func @kernel(%arg0: i32, %arg1: memref<16x128xf32, #tpu.memory_space<vmem>>, %arg2: memref<16x128xf32, #tpu.memory_space<vmem>>, %arg3: memref<3x128xf32, #tpu.memory_space<vmem>>) attributes {dimension_semantics = [#tpu.dimension_semantics<parallel>], iteration_bounds = array<i64: 1>, scalar_prefetch = 0 : i64, scratch_operands = 0 : i64, tpu.core_type = #tpu.core_type<tc>, window_params = [{transform_indices = @transform_0, window_bounds = array<i64: 16, 128>}, {transform_indices = @transform_1, window_bounds = array<i64: 16, 128>}, {transform_indices = @transform_2, window_bounds = array<i64: 3, 128>}]} {
    %c0 = arith.constant 0 : index
    %c0_0 = arith.constant 0 : index
    %0 = vector.load %arg1[%c0, %c0_0] : memref<16x128xf32, #tpu.memory_space<vmem>>, vector<16x128xf32>
    %c0_1 = arith.constant 0 : index
    %c0_2 = arith.constant 0 : index
    %1 = vector.load %arg2[%c0_1, %c0_2] : memref<16x128xf32, #tpu.memory_space<vmem>>, vector<16x128xf32>
    %cst = arith.constant dense<0.000000e+00> : vector<128xf32>
    %2 = vector.multi_reduction <add>, %0, %cst [0] : vector<16x128xf32> to vector<128xf32>
    %3 = vector.shape_cast %2 : vector<128xf32> to vector<1x128xf32>
    %c0_3 = arith.constant 0 : index
    %c0_4 = arith.constant 0 : index
    %4 = vector.load %arg3[%c0_3, %c0_4] : memref<3x128xf32, #tpu.memory_space<vmem>>, vector<1x128xf32>
    tpu.vector_store %arg3[%c0_3, %c0_4], %3 {strides = array<i32>} : memref<3x128xf32, #tpu.memory_space<vmem>>, vector<1x128xf32>,
    %5 = arith.mulf %1, %0 : vector<16x128xf32>
    %cst_5 = arith.constant dense<0.000000e+00> : vector<128xf32>
    %6 = vector.multi_reduction <add>, %5, %cst_5 [0] : vector<16x128xf32> to vector<128xf32>
    %7 = vector.shape_cast %6 : vector<128xf32> to vector<1x128xf32>
    %c1 = arith.constant 1 : index
    %c0_6 = arith.constant 0 : index
    %8 = vector.load %arg3[%c1, %c0_6] : memref<3x128xf32, #tpu.memory_space<vmem>>, vector<1x128xf32>
    tpu.vector_store %arg3[%c1, %c0_6], %7 {strides = array<i32>} : memref<3x128xf32, #tpu.memory_space<vmem>>, vector<1x128xf32>,
    %cst_7 = arith.constant dense<0.000000e+00> : vector<128xf32>
    %9 = vector.multi_reduction <add>, %1, %cst_7 [0] : vector<16x128xf32> to vector<128xf32>
    %10 = vector.shape_cast %9 : vector<128xf32> to vector<1x128xf32>
    %c2 = arith.constant 2 : index
    %c0_8 = arith.constant 0 : index
    %11 = vector.load %arg3[%c2, %c0_8] : memref<3x128xf32, #tpu.memory_space<vmem>>, vector<1x128xf32>
    tpu.vector_store %arg3[%c2, %c0_8], %10 {strides = array<i32>} : memref<3x128xf32, #tpu.memory_space<vmem>>, vector<1x128xf32>,
    return
  }
  func.func @transform_0(%arg0: i32) -> (i32, i32) {
    %c0_i32 = arith.constant 0 : i32
    %c0_i32_0 = arith.constant 0 : i32
    return %arg0, %c0_i32 : i32, i32
  }
  func.func @transform_1(%arg0: i32) -> (i32, i32) {
    %c0_i32 = arith.constant 0 : i32
    %c0_i32_0 = arith.constant 0 : i32
    return %arg0, %c0_i32 : i32, i32
  }
  func.func @transform_2(%arg0: i32) -> (i32, i32) {
    %c0_i32 = arith.constant 0 : i32
    %c0_i32_0 = arith.constant 0 : i32
    return %c0_i32, %arg0 : i32, i32
  }
}

</mosaic_0001>

<bundles_post_ra>
// kernel: gdl_loss.1
= control target key start
LH: loop header
LB: loop body
LE: loop exit
PB: predicated region body
PF: predicated region fallthrough
CT: control target
= control target key end

     0   :  { %s81_s0 = inlined_call_operand.vmem [shape: f32[16,128], index: 0, kind: input, shape index: {}]   ;;  %s82_s1 = inlined_call_operand.vmem [shape: f32[16,128], index: 1, kind: input, shape index: {}]   ;;  %s83_s2 = inlined_call_operand.vmem [shape: f32[3,128], index: 2, kind: output, shape index: {}]  }
   0x1   :  { %v11_v0 = vld [vmem:[%s81_s0] sm:$0xff]  ;;  %v12_v1 = vld [vmem:[%s81_s0 + $0x8] sm:$0xff] }
   0x2   :  { %v13_v2 = vld [vmem:[%s82_s1] sm:$0xff]  ;;  %v15_v3 = vadd.f32 %v12_v1, %v11_v0  ;;  %v14_v4 = vld [vmem:[%s82_s1 + $0x8] sm:$0xff] }
   0x3   :  { %v23_v5 = vmul.f32 %v13_v2, %v11_v0  ;;  %v24_v6 = vmul.f32 %v14_v4, %v12_v1  ;;  %v33_v7 = vadd.f32 %v14_v4, %v13_v2 }
   0x4   :  { %v16_v8 = vrot.slane %v15_v3, 4 }
   0x5   :  { %v25_v9 = vadd.f32 %v24_v6, %v23_v5  ;;  %v34_v10 = vrot.slane %v33_v7, 4 }
   0x6   :  { %v17_v11 = vadd.f32 %v16_v8, %v15_v3 }
   0x7   :  { %v26_v12 = vrot.slane %v25_v9, 4  ;;  %v35_v13 = vadd.f32 %v34_v10, %v33_v7 }
   0x8   :  { %v18_v14 = vrot.slane %v17_v11, 2 }
   0x9   :  { %v27_v15 = vadd.f32 %v26_v12, %v25_v9  ;;  %v36_v16 = vrot.slane %v35_v13, 2 }
   0xa   :  { %v19_v17 = vadd.f32 %v18_v14, %v17_v11 }
   0xb   :  { %v28_v18 = vrot.slane %v27_v15, 2  ;;  %v37_v19 = vadd.f32 %v36_v16, %v35_v13 }
   0xc   :  { %v20_v20 = vrot.slane %v19_v17, 1 }
   0xd   :  { %v29_v21 = vadd.f32 %v28_v18, %v27_v15  ;;  %v38_v22 = vrot.slane %v37_v19, 1 }
   0xe   :  { %v21_v23 = vadd.f32 %v20_v20, %v19_v17 }
   0xf   :  { %v30_v24 = vrot.slane %v29_v21, 1  ;;  %v39_v25 = vadd.f32 %v38_v22, %v37_v19 }
  0x10   :  { %22 = vst [vmem:[%s83_s2] sm:$0x1] %v21_v23 }
  0x11   :  { %v31_v26 = vadd.f32 %v30_v24, %v29_v21  ;;  %40 = vst [vmem:[%s83_s2 + $0x2] sm:$0x1] %v39_v25 }
  0x13   :  { %32 = vst [vmem:[%s83_s2 + $0x1] sm:$0x1] %v31_v26 }

</bundles_post_ra>
